<compile_context>
chip_gen: v7x
topology: tpu7x:2x2x1
jax: 0.10.0
libtpu: 0.0.40
codegen_flags: <defaults>
</compile_context>

<pallas_src>
import functools

import jax
import jax.numpy as jnp
from jax.experimental import pallas as pl
from jax.experimental.pallas import tpu as pltpu

EPSILON = 0.001


def _pd_quad_cost_kernel(zt_ref, a_ref, out_ref, *, epsilon):
    """zt_ref: (F, TB) feature-major input tile (batch on lanes).
    a_ref:  (F, F) = blockdiag(N, M).
    out_ref: (1, TB) lane-dense cost row: ||A z_b||^2 + eps*||z_b||^2 per column b.
    """
    z = zt_ref[...]                                                    # (F, TB)
    az = jnp.dot(a_ref[...], z, preferred_element_type=jnp.float32)   # (F, TB)
    out_ref[...] = (
        jnp.sum(az * az, axis=0, keepdims=True)
        + epsilon * jnp.sum(z * z, axis=0, keepdims=True)
    )                                                                  # (1, TB)


def _round_up(a, b):
    return (a + b - 1) // b * b


def pd_quadratic_stage_cost(inp, N, M, epsilon=EPSILON, *, tb_max=4096):
    """inp: (B, n+m) float32, N: (n, n), M: (m, m). Returns (B, 1) float32."""
    B, F = inp.shape
    n = N.shape[0]
    m = M.shape[0]
    assert F == n + m

    # Batch tile: multiple of 128 (lane width); large enough for pipelining, tiny
    # in bytes (F is small), so VMEM is never the constraint on any generation.
    TB = min(tb_max, _round_up(B, 128))
    Bp = _round_up(B, TB)
    num_tiles = Bp // TB

    # A = blockdiag(N, M), built once in the wrapper (hoisted out of the tile loop).
    A = jnp.zeros((F, F), jnp.float32)
    A = A.at[:n, :n].set(N.astype(jnp.float32))
    A = A.at[n:, n:].set(M.astype(jnp.float32))

    # Feature-major, batch-padded presentation: (F, Bp). Padded columns are zero,
    # contribute zero cost, and are sliced away below (handles ragged B).
    zt = jnp.pad(inp.astype(jnp.float32), ((0, Bp - B), (0, 0))).T     # (F, Bp)

    kernel = functools.partial(_pd_quad_cost_kernel, epsilon=float(epsilon))

    out = pl.pallas_call(
        kernel,
        out_shape=jax.ShapeDtypeStruct((1, Bp), jnp.float32),
        grid_spec=pltpu.PrefetchScalarGridSpec(
            num_scalar_prefetch=0,
            grid=(num_tiles,),
            in_specs=[
                pl.BlockSpec((F, TB), lambda i: (0, i)),   # input tile, batch on lanes
                pl.BlockSpec((F, F), lambda i: (0, 0)),    # blockdiag(N, M), tiny
            ],
            out_specs=pl.BlockSpec((1, TB), lambda i: (0, i)),
        ),
        compiler_params=pltpu.CompilerParams(
            # Independent per-batch-tile work -> shard across both TCs on v7x;
            # neutral on v5e/v6e.
            dimension_semantics=("parallel",),
            # Explicit scoped-VMEM budget; our double-buffered tiles use < 1 MiB,
            # and 32 MiB is safe on v5e/v6e/v7x alike.
            vmem_limit_bytes=32 * 1024 * 1024,
        ),
    )(zt, A)

    return out[0, :B][:, None]                                         # (B, 1)


def reference(inp, N, M, epsilon=EPSILON):
    n = N.shape[0]
    m = M.shape[0]
    Q = N.T @ N + epsilon * jnp.eye(n, dtype=jnp.float32)
    R = M.T @ M + epsilon * jnp.eye(m, dtype=jnp.float32)
    x, u = inp[..., :n], inp[..., n:]
    return ((x @ Q * x).sum(axis=1, keepdims=True)
            + (u @ R * u).sum(axis=1, keepdims=True))


if __name__ == "__main__":
    # Small shapes consistent with the module: state dim n=4, input dim m=4, batch=8.
    n, m, B = 4, 4, 8
    key = jax.random.PRNGKey(0)
    kN, kM, kX = jax.random.split(key, 3)

    # Deterministic "torch.rand"-style init: uniform [0, 1)
    N = jax.random.uniform(kN, (n, n), dtype=jnp.float32)
    M = jax.random.uniform(kM, (m, m), dtype=jnp.float32)
    inp = jax.random.uniform(kX, (B, n + m), dtype=jnp.float32)

    out = jax.block_until_ready(pd_quadratic_stage_cost(inp, N, M))
    ref = reference(inp, N, M)

    assert out.shape == (B, 1), out.shape
    assert jnp.allclose(out, ref, atol=1e-4, rtol=1e-5), (out, ref)
    print("KERNEL_OK")
</pallas_src>

<mosaic_0001>
module attributes {stable_mosaic.version = 11 : i64} {
  func.func @_pd_quad_cost_kernel(%arg0: i32, %arg1: memref<8x128xf32, #tpu.memory_space<vmem>>, %arg2: memref<8x8xf32, #tpu.memory_space<vmem>>, %arg3: memref<1x128xf32, #tpu.memory_space<vmem>>) attributes {dimension_semantics = [#tpu.dimension_semantics<parallel>], iteration_bounds = array<i64: 1>, scalar_prefetch = 0 : i64, scratch_operands = 0 : i64, tpu.core_type = #tpu.core_type<tc>, window_params = [{transform_indices = @transform_0, window_bounds = array<i64: 8, 128>}, {pipeline_mode = #tpu.pipeline_mode<synchronous>, transform_indices = @transform_1, window_bounds = array<i64: 8, 8>}, {transform_indices = @transform_2, window_bounds = array<i64: 1, 128>}]} {
    %c0 = arith.constant 0 : index
    %c0_0 = arith.constant 0 : index
    %0 = vector.load %arg1[%c0, %c0_0] : memref<8x128xf32, #tpu.memory_space<vmem>>, vector<8x128xf32>
    %c0_1 = arith.constant 0 : index
    %c0_2 = arith.constant 0 : index
    %1 = vector.load %arg2[%c0_1, %c0_2] : memref<8x8xf32, #tpu.memory_space<vmem>>, vector<8x8xf32>
    %cst = arith.constant dense<0.000000e+00> : vector<8x128xf32>
    %2 = tpu.matmul %1, %0, %cst {dimension_numbers = #tpu.dot_dimension_numbers<[1], [0], [0], [1], [0, 0, 1, 1], [], []>} : vector<8x8xf32>, vector<8x128xf32>, vector<8x128xf32> -> vector<8x128xf32>
    %3 = arith.mulf %2, %2 : vector<8x128xf32>
    %cst_3 = arith.constant dense<0.000000e+00> : vector<128xf32>
    %4 = vector.multi_reduction <add>, %3, %cst_3 [0] : vector<8x128xf32> to vector<128xf32>
    %5 = vector.shape_cast %4 : vector<128xf32> to vector<1x128xf32>
    %6 = arith.mulf %0, %0 : vector<8x128xf32>
    %cst_4 = arith.constant dense<0.000000e+00> : vector<128xf32>
    %7 = vector.multi_reduction <add>, %6, %cst_4 [0] : vector<8x128xf32> to vector<128xf32>
    %8 = vector.shape_cast %7 : vector<128xf32> to vector<1x128xf32>
    %cst_5 = arith.constant 1.000000e-03 : f32
    %9 = vector.broadcast %cst_5 : f32 to vector<1x128xf32>
    %10 = arith.mulf %9, %8 : vector<1x128xf32>
    %11 = arith.addf %5, %10 : vector<1x128xf32>
    %c0_6 = arith.constant 0 : index
    %c0_7 = arith.constant 0 : index
    %12 = vector.load %arg3[%c0_6, %c0_7] : memref<1x128xf32, #tpu.memory_space<vmem>>, vector<1x128xf32>
    tpu.vector_store %arg3[%c0_6, %c0_7], %11 {strides = array<i32>} : memref<1x128xf32, #tpu.memory_space<vmem>>, vector<1x128xf32>,
    return
  }
  func.func @transform_0(%arg0: i32) -> (i32, i32) {
    %c0_i32 = arith.constant 0 : i32
    %c0_i32_0 = arith.constant 0 : i32
    return %c0_i32, %arg0 : i32, i32
  }
  func.func @transform_1(%arg0: i32) -> (i32, i32) {
    %c0_i32 = arith.constant 0 : i32
    %c0_i32_0 = arith.constant 0 : i32
    %c0_i32_1 = arith.constant 0 : i32
    return %c0_i32, %c0_i32_0 : i32, i32
  }
  func.func @transform_2(%arg0: i32) -> (i32, i32) {
    %c0_i32 = arith.constant 0 : i32
    %c0_i32_0 = arith.constant 0 : i32
    return %c0_i32, %arg0 : i32, i32
  }
}

</mosaic_0001>

<bundles_post_ra>
// kernel: tpu_custom_call.1
= control target key start
LH: loop header
LB: loop body
LE: loop exit
PB: predicated region body
PF: predicated region fallthrough
CT: control target
= control target key end

     0   :  { %7 = vsyncpa [#allocation3], 0  ;;  %s286_s0 = inlined_call_operand.hbm [shape: f32[8,128], index: 0, kind: input, shape index: {}]   ;;  %s287_s1 = inlined_call_operand.hbm [shape: f32[8,8], index: 1, kind: input, shape index: {}]   ;;  %s288_s2 = inlined_call_operand.hbm [shape: f32[1,128], index: 2, kind: output, shape index: {}]  }
   0x1   :  { %8 = vsyncpa [#allocation6], 0 }
   0x2   :  { %9 = vsyncpa [#allocation4], 0  ;;  %s230_s9 = smov [#allocation2]   ;;  %s231_s11 = smov [#allocation5]  }
   0x3   :  { %s16_s10 = sshll.u32 %s230_s9, 4  ;;  %s26_s12 = sshll.u32 %s231_s11, 4  ;;  %s17_s10 = int_to_ptr.vmem [resolvable:$true] %s16_s10  ;;  %s27_s12 = int_to_ptr.vmem [resolvable:$true] %s26_s12 }
   0x4   :  { %s158_s15 = scalar_lea.hbm %s286_s0, 128 }
   0x5   :  { %p159_p0 = scmp.ne.s32.totalorder %s286_s0, %s158_s15  ;;  %p162_p1 = scmp.lt.u32.totalorder %s158_s15, %s286_s0 }
   0x7   :  { %p164_p2 = pnand %p162_p1, %p159_p0 }
   0x9   :  { %167 = shalt.err (!%p164_p2)
}
   0xa   :  { %s168_s20 = scalar_lea.vmem %s17_s10, 128  ;;  %p173_p4 = scmp.lt.s32.totalorder %s17_s10, %s17_s10 }
   0xb   :  { %p169_p3 = scmp.ne.s32.totalorder %s17_s10, %s168_s20  ;;  %p174_p5 = scmp.lt.s32.totalorder %s168_s20, %s168_s20 }
   0xd   :  { %p175_p6 = por %p174_p5, %p173_p4 }
   0xf   :  { %p176_p7 = pnand %p175_p6, %p169_p3 }
  0x11   :  { %179 = shalt.err (!%p176_p7)
}
  0x12   :  { %19 = dma.hbm_to_vmem [thread:$0]  %s286_s0, 128, %s17_s10, [#allocation3]  }
  0x13   :  { %s180_s25 = scalar_lea.hbm %s287_s1, 128 }
  0x14   :  { %p181_p8 = scmp.ne.s32.totalorder %s287_s1, %s180_s25  ;;  %p184_p9 = scmp.lt.u32.totalorder %s180_s25, %s287_s1 }
  0x16   :  { %p186_p10 = pnand %p184_p9, %p181_p8 }
  0x18   :  { %189 = shalt.err (!%p186_p10)
}
  0x19   :  { %s190_s30 = scalar_lea.vmem %s27_s12, 128  ;;  %p195_p12 = scmp.lt.s32.totalorder %s27_s12, %s27_s12 }
  0x1a   :  { %p191_p11 = scmp.ne.s32.totalorder %s27_s12, %s190_s30  ;;  %p196_p13 = scmp.lt.s32.totalorder %s190_s30, %s190_s30 }
  0x1c   :  { %p197_p0 = por %p196_p13, %p195_p12 }
  0x1e   :  { %p198_p1 = pnand %p197_p0, %p191_p11 }
  0x20   :  { %201 = shalt.err (!%p198_p1)
}
  0x21   :  { %29 = dma.hbm_to_vmem [thread:$0]  %s287_s1, 128, %s27_s12, [#allocation6]  }
  0x22   :  { %224 = dma.done.wait [#allocation3], 128  }
  0x23   :  { %225 = vsyncadd [#allocation3], 4294967168 }
  0x24   :  { %226 = dma.done.wait [#allocation6], 128  }
  0x25   :  { %227 = vsyncadd [#allocation6], 4294967168  ;;  %v232_v0 = vmov 0.0   ;;  %vm233_vm0 = vmmov 0   ;;  %vm38_vm1 = vcmask 64512   ;;  %v36_v1 = vld [vmem:[#allocation2] sm:$0xff] }
  0x26   :  { %148 = vmatprep.subr.mxu0 %v232_v0  ;;  %150 = vmatprep.mubr.msk.f32.mxu0 %vm233_vm0, %v232_v0  ;;  %v37_v2 = vld [vmem:[#allocation5] sm:$0xff]  ;;  %v119_v3 = vmul.f32 %v36_v1, %v36_v1  ;;  %s234_s1 = smov [#allocation7]  }
  0x27   :  { %149 = vmatpush3.msra.mxu0 %v36_v1  ;;  %s135_s4 = sshll.u32 %s234_s1, 4  ;;  %s136_s4 = int_to_ptr.vmem [resolvable:$true] %s135_s4 }
  0x28   :  { %151 = vmatmul.mubr.msk.f32.vlgmr.msra.gmra.mrb[0].mxu0 %vm38_vm1, %v37_v2  ;;  %v120_v4 = vrot.slane %v119_v3, 4  ;;  %s202_s5 = scalar_lea.vmem %s136_s4, 16  ;;  %s206_s6 = scalar_lea.vmem %s136_s4, 32 }
  0x29   :  { %p203_p2 = scmp.ne.s32.totalorder %s136_s4, %s202_s5  ;;  %p207_p3 = scmp.lt.s32.totalorder %s136_s4, %s136_s4 }
  0x2a   :  { %v121_v5 = vadd.f32 %v120_v4, %v119_v3  ;;  %p208_p4 = scmp.lt.s32.totalorder %s206_s6, %s202_s5 }
  0x2c   :  { %v122_v6 = vrot.slane %v121_v5, 2  ;;  %p209_p5 = por %p208_p4, %p207_p3 }
  0x2e   :  { %v123_v7 = vadd.f32 %v122_v6, %v121_v5  ;;  %p210_p6 = pnand %p209_p5, %p203_p2 }
  0x30   :  { %v124_v11 = vrot.slane %v123_v7, 1 }
  0x32   :  { %v125_v15 = vadd.f32 %v124_v11, %v123_v7 }
  0x34   :  { %v126_v18 = vmul.f32 0.001, %v125_v15 }
  0xfb   :  { %v108_v8 = vpop.f32.mrb[0].mxu0 }
  0xfc   :  { %v112_v9 = vmul.f32 %v108_v8, %v108_v8  ;;  %v152_v10 = vpop.f32.mrb[1].mxu0 }
  0xfe   :  { %v113_v12 = vrot.slane %v112_v9, 4 }
 0x100   :  { %v114_v13 = vadd.f32 %v113_v12, %v112_v9 }
 0x102   :  { %v115_v14 = vrot.slane %v114_v13, 2 }
 0x104   :  { %v116_v16 = vadd.f32 %v115_v14, %v114_v13 }
 0x106   :  { %v117_v17 = vrot.slane %v116_v16, 1 }
 0x108   :  { %v118_v19 = vadd.f32 %v117_v17, %v116_v16 }
 0x10a   :  { %v127_v20 = vadd.f32 %v126_v18, %v118_v19 }
 0x10c   :  { %128 = vst [vmem:[#allocation7] sm:$0x1] %v127_v20 }
 0x10d   :  { %213 = shalt.err (!%p210_p6)
}
 0x10e   :  { %s214_s9 = scalar_lea.hbm %s288_s2, 16 }
 0x10f   :  { %p215_p7 = scmp.ne.s32.totalorder %s288_s2, %s214_s9  ;;  %p218_p8 = scmp.lt.u32.totalorder %s214_s9, %s288_s2 }
 0x111   :  { %p220_p9 = pnand %p218_p8, %p215_p7 }
 0x113   :  { %223 = shalt.err (!%p220_p9)
}
 0x114   :  { %138 = dma.vmem_to_hbm [thread:$0]  %s136_s4, 16, %s288_s2, [#allocation4]  }
 0x115   :  { %228 = dma.done.wait [#allocation4], 16  }
 0x116   :  { %229 = vsyncadd [#allocation4], 4294967280 }
 0x117   :  { %142 = vsyncpa [#allocation3], 1 }
 0x118   :  { %143 = vsyncpa [#allocation6], 1 }
 0x119   :  { %144 = vsyncpa [#allocation4], 1 }

</bundles_post_ra>
